<compile_context>
chip_gen: v7x
topology: tpu7x:2x2x1
jax: 0.10.0
libtpu: 0.0.40
codegen_flags: <defaults>
</compile_context>

<pallas_src>
import jax
import jax.numpy as jnp
from jax.experimental import pallas as pl
from jax.experimental.pallas import tpu as pltpu

HIDDEN_DIM = 64            # hidden_dim in the reference module
NUM_CLASSES = 87           # len(classes)
PADDED_CLASSES = 128       # lane-dense output width (sliced back to 87 in the wrapper)
INPUT_DIM = 3              # synthetic data.num_node_features; conv1 in_channels = INPUT_DIM + 1
MAX_GRAPHS_PER_BLOCK = 8   # graphs fused into one grid step


def gnn_kernel(a_ref, apool_ref, x_ref, w1t_ref, b1_ref, wf_ref, c_ref, out_ref, p_ref):
    # a_ref:     [gb, N, N]   normalized adjacencies (self-loops included)
    # apool_ref: [gb, 1, N]   mean of A_hat rows (folds global_mean_pool + 2nd A-matmul)
    # x_ref:     [gb, N, Din]
    # w1t_ref:   [Din, H]     conv1 weight (transposed), resident
    # b1_ref:    [1, H]
    # wf_ref:    [H, 128]     Wv^T @ Wo^T @ W2^T, zero-padded to 128 lanes, resident
    # c_ref:     [gb, 128]    per-graph constant = sum(a_pool) * b_f + b2 (padded)
    # p_ref:     [gb, H]      VMEM scratch for pooled per-graph rows
    gb = a_ref.shape[0]
    w1t = w1t_ref[...]
    b1 = b1_ref[...]

    # Per-graph GCNConv#1 + ReLU + pooled matvec, fully unrolled (gb is small & static).
    for g in range(gb):
        xw = jnp.dot(x_ref[g], w1t, preferred_element_type=jnp.float32)          # [N, H]
        h = jnp.dot(a_ref[g], xw, preferred_element_type=jnp.float32) + b1       # [N, H]
        h = jnp.maximum(h, 0.0)                                                  # ReLU
        p_ref[pl.ds(g, 1), :] = jnp.dot(apool_ref[g], h,
                                        preferred_element_type=jnp.float32)      # [1, H]

    # Attention(L=1) + conv2 linear + pool, folded into one lane-dense matmul for the block.
    out_ref[...] = jnp.dot(p_ref[...], wf_ref[...],
                           preferred_element_type=jnp.float32) + c_ref[...]


def gcn_norm_dense(edge_index, edge_weight, num_nodes):
    """Dense normalized adjacency matching PyG gcn_norm (self-loops with weight 1)."""
    src, dst = edge_index[0], edge_index[1]
    loop = jnp.arange(num_nodes, dtype=edge_index.dtype)
    src = jnp.concatenate([src, loop])
    dst = jnp.concatenate([dst, loop])
    w = jnp.concatenate([edge_weight, jnp.ones((num_nodes,), jnp.float32)])
    deg = jnp.zeros((num_nodes,), jnp.float32).at[dst].add(w)
    dinv = jnp.where(deg > 0, jax.lax.rsqrt(deg), 0.0)
    w_norm = dinv[src] * w * dinv[dst]
    # out[dst] += w_norm * x[src]  ==>  A_hat[dst, src] = w_norm
    return jnp.zeros((num_nodes, num_nodes), jnp.float32).at[dst, src].add(w_norm)


def init_params(key):
    ks = jax.random.split(key, 6)
    din = INPUT_DIM + 1
    # GCNConv #1: lin.weight [H, din], bias [H]
    w1 = jax.random.normal(ks[0], (HIDDEN_DIM, din), jnp.float32) * 0.2
    b1 = jnp.zeros((1, HIDDEN_DIM), jnp.float32)
    # MultiheadAttention params (only the V / out_proj path matters for seq_len == 1)
    in_proj_w = jax.random.normal(ks[1], (3 * HIDDEN_DIM, HIDDEN_DIM), jnp.float32) * 0.1
    in_proj_b = jax.random.normal(ks[2], (3 * HIDDEN_DIM,), jnp.float32) * 0.01
    wv = in_proj_w[2 * HIDDEN_DIM:3 * HIDDEN_DIM]
    bv = in_proj_b[2 * HIDDEN_DIM:3 * HIDDEN_DIM]
    wo = jax.random.normal(ks[3], (HIDDEN_DIM, HIDDEN_DIM), jnp.float32) * 0.1
    bo = jax.random.normal(ks[4], (HIDDEN_DIM,), jnp.float32) * 0.01
    # GCNConv #2: lin.weight [C, H], bias [C]
    w2 = jax.random.normal(ks[5], (NUM_CLASSES, HIDDEN_DIM), jnp.float32) * 0.1
    b2 = jnp.zeros((NUM_CLASSES,), jnp.float32)

    # Fold attention (seq_len=1 => out_proj(v_proj(.))) and conv2's linear into one affine map:
    #   H2 = relu_h @ Wv^T @ Wo^T + (bv @ Wo^T + bo);   H2 @ W2^T = relu_h @ W_f + b_f
    w_vo = wv.T @ wo.T                    # [H, H]
    b_vo = bv @ wo.T + bo                 # [H]
    w_f = w_vo @ w2.T                     # [H, C]
    b_f = b_vo @ w2.T                     # [C]
    w_f_pad = jnp.zeros((HIDDEN_DIM, PADDED_CLASSES), jnp.float32).at[:, :NUM_CLASSES].set(w_f)
    b_f_pad = jnp.zeros((PADDED_CLASSES,), jnp.float32).at[:NUM_CLASSES].set(b_f)
    b2_pad = jnp.zeros((PADDED_CLASSES,), jnp.float32).at[:NUM_CLASSES].set(b2)

    fused = dict(w1t=w1.T, b1=b1, wf=w_f_pad, bf=b_f_pad, b2=b2_pad)
    raw = dict(w1=w1, b1=b1, wv=wv, bv=bv, wo=wo, bo=bo, w2=w2, b2=b2)
    return fused, raw


def _pad_leading(arr, g_pad):
    pad = g_pad - arr.shape[0]
    if pad == 0:
        return arr
    return jnp.concatenate([arr, jnp.zeros((pad,) + arr.shape[1:], arr.dtype)], axis=0)


def gnn_forward(x, edge_index, edge_attr, params):
    """Batched forward.  x: [G, N, Din], edge_index: [G, 2, E], edge_attr: [G, E, 1]."""
    # torch forward's `cat([x[:, :-1], x[:, -1:].view(-1,1)], 1)` is an identity -> pass x through.
    g_graphs, n, din = x.shape

    # Same normalized A_hat for both convs (same edge_index / edge_attr).
    a = jax.vmap(gcn_norm_dense, in_axes=(0, 0, None))(edge_index, edge_attr[..., 0], n)  # [G,N,N]
    a_pool = jnp.mean(a, axis=1, keepdims=True)                 # [G, 1, N]  mean over dst rows
    s = jnp.sum(a_pool, axis=(1, 2))                            # [G]
    # per-graph constant row: c = sum(a_pool) * b_f + b2  (both already lane-padded)
    c = s[:, None] * params["bf"][None, :] + params["b2"][None, :]      # [G, 128]

    # Fuse up to MAX_GRAPHS_PER_BLOCK graphs into one grid step; pad the batch if needed.
    gb = min(g_graphs, MAX_GRAPHS_PER_BLOCK)
    n_blocks = pl.cdiv(g_graphs, gb)
    g_pad = n_blocks * gb
    a_p = _pad_leading(a, g_pad)
    a_pool_p = _pad_leading(a_pool, g_pad)
    x_p = _pad_leading(x, g_pad)
    c_p = _pad_leading(c, g_pad)

    flops_per_graph = (2 * n * din * HIDDEN_DIM              # X @ W1^T
                       + 2 * n * n * HIDDEN_DIM              # A @ h
                       + 2 * n * HIDDEN_DIM                  # a_pool @ h
                       + 2 * HIDDEN_DIM * PADDED_CLASSES)    # p @ W_f
    bytes_accessed = int(a_p.size * 4 + a_pool_p.size * 4 + x_p.size * 4 + c_p.size * 4
                         + params["w1t"].size * 4 + params["b1"].size * 4
                         + params["wf"].size * 4 + g_pad * PADDED_CLASSES * 4)
    ce = pl.CostEstimate(flops=g_pad * flops_per_graph, transcendentals=0,
                         bytes_accessed=bytes_accessed)

    out_pad = pl.pallas_call(
        gnn_kernel,
        grid=(n_blocks,),
        in_specs=[
            pl.BlockSpec((gb, n, n), lambda i: (i, 0, 0)),          # A_hat   (per block)
            pl.BlockSpec((gb, 1, n), lambda i: (i, 0, 0)),          # a_pool  (per block)
            pl.BlockSpec((gb, n, din), lambda i: (i, 0, 0)),        # X       (per block)
            pl.BlockSpec(params["w1t"].shape, lambda i: (0, 0)),    # W1^T    (resident)
            pl.BlockSpec(params["b1"].shape, lambda i: (0, 0)),     # b1      (resident)
            pl.BlockSpec(params["wf"].shape, lambda i: (0, 0)),     # W_f     (resident)
            pl.BlockSpec((gb, PADDED_CLASSES), lambda i: (i, 0)),   # c       (per block)
        ],
        out_specs=pl.BlockSpec((gb, PADDED_CLASSES), lambda i: (i, 0)),
        out_shape=jax.ShapeDtypeStruct((g_pad, PADDED_CLASSES), jnp.float32),
        scratch_shapes=[pltpu.VMEM((gb, HIDDEN_DIM), jnp.float32)],
        compiler_params=pltpu.CompilerParams(dimension_semantics=("parallel",)),
        cost_estimate=ce,
    )(a_p, a_pool_p, x_p, params["w1t"], params["b1"], params["wf"], c_p)

    return out_pad[:g_graphs, :NUM_CLASSES]


def gnn_reference(x, edge_index, edge_attr, raw):
    """Pure-JAX reference matching the PyTorch forward (unfused parameters)."""
    n = x.shape[1]
    a = jax.vmap(gcn_norm_dense, in_axes=(0, 0, None))(edge_index, edge_attr[..., 0], n)
    h = jnp.einsum('gnm,gmh->gnh', a, x @ raw["w1"].T) + raw["b1"]
    h = jnp.maximum(h, 0.0)
    # MultiheadAttention with seq_len == 1: softmax over one key is exactly 1 -> out_proj(v_proj(h)).
    h = (h @ raw["wv"].T + raw["bv"]) @ raw["wo"].T + raw["bo"]
    z = jnp.einsum('gnm,gmc->gnc', a, h @ raw["w2"].T) + raw["b2"]
    return jnp.mean(z, axis=1)                                    # global_mean_pool


if __name__ == "__main__":
    key = jax.random.PRNGKey(0)
    k_feat, k_src, k_off, k_w, k_par = jax.random.split(key, 5)

    G = 8            # graphs per batch (all fused into one kernel step)
    N = 32           # nodes per graph
    E = 96           # directed edges per graph

    # data.x : [G, N, INPUT_DIM + 1]  (conv1 expects input_dim + 1 channels)
    x = jax.random.normal(k_feat, (G, N, INPUT_DIM + 1), jnp.float32)
    # Edges with src != dst so unconditional self-loop insertion matches gcn_norm exactly.
    src = jax.random.randint(k_src, (G, E), 0, N)
    off = jax.random.randint(k_off, (G, E), 1, N)
    dst = (src + off) % N
    edge_index = jnp.stack([src, dst], axis=1).astype(jnp.int32)              # [G, 2, E]
    edge_attr = jax.random.uniform(k_w, (G, E, 1), jnp.float32, 0.1, 1.0)     # 'd2' weights

    params, raw = init_params(k_par)

    fwd = jax.jit(gnn_forward)
    out = jax.block_until_ready(fwd(x, edge_index, edge_attr, params))
    assert out.shape == (G, NUM_CLASSES)

    ref = gnn_reference(x, edge_index, edge_attr, raw)
    assert jnp.allclose(out, ref, atol=1e-3, rtol=1e-3), "kernel output mismatch vs reference"

    # TODO(synk): graphml loading / MyGraphDataset is file-I/O glue with no kernel equivalent.
    print("KERNEL_OK")
</pallas_src>

<mosaic_0001>
module attributes {stable_mosaic.version = 11 : i64} {
  func.func private @main(%arg0: i32) attributes {dimension_semantics = [#tpu.dimension_semantics<core_parallel>], iteration_bounds = array<i64: 2>, tpu.core_type = #tpu.core_type<sc_scalar_subcore>, window_params = []} {
    return
  }
}

module attributes {stable_mosaic.version = 11 : i64} {
  func.func private @main(%arg0: i32) attributes {dimension_semantics = [#tpu.dimension_semantics<core_parallel>], iteration_bounds = array<i64: 2>, tpu.core_type = #tpu.core_type<sc_scalar_subcore>, window_params = []} {
    return
  }
}

module attributes {stable_mosaic.version = 11 : i64} {
  func.func @gnn_kernel(%arg0: i32, %arg1: memref<8x32x32xf32, #tpu.memory_space<vmem>>, %arg2: memref<8x1x32xf32, #tpu.memory_space<vmem>>, %arg3: memref<8x32x4xf32, #tpu.memory_space<vmem>>, %arg4: memref<4x64xf32, #tpu.memory_space<vmem>>, %arg5: memref<1x64xf32, #tpu.memory_space<vmem>>, %arg6: memref<64x128xf32, #tpu.memory_space<vmem>>, %arg7: memref<8x128xf32, #tpu.memory_space<vmem>>, %arg8: memref<8x128xf32, #tpu.memory_space<vmem>>, %arg9: memref<8x64xf32, #tpu.memory_space<vmem>>) attributes {dimension_semantics = [#tpu.dimension_semantics<parallel>], iteration_bounds = array<i64: 1>, scalar_prefetch = 0 : i64, scratch_operands = 1 : i64, tpu.core_type = #tpu.core_type<tc>, window_params = [{transform_indices = @transform_0, window_bounds = array<i64: 8, 32, 32>}, {transform_indices = @transform_1, window_bounds = array<i64: 8, 1, 32>}, {transform_indices = @transform_2, window_bounds = array<i64: 8, 32, 4>}, {pipeline_mode = #tpu.pipeline_mode<synchronous>, transform_indices = @transform_3, window_bounds = array<i64: 4, 64>}, {pipeline_mode = #tpu.pipeline_mode<synchronous>, transform_indices = @transform_4, window_bounds = array<i64: 1, 64>}, {pipeline_mode = #tpu.pipeline_mode<synchronous>, transform_indices = @transform_5, window_bounds = array<i64: 64, 128>}, {transform_indices = @transform_6, window_bounds = array<i64: 8, 128>}, {transform_indices = @transform_7, window_bounds = array<i64: 8, 128>}]} {
    %c0 = arith.constant 0 : index
    %c0_0 = arith.constant 0 : index
    %0 = vector.load %arg4[%c0, %c0_0] : memref<4x64xf32, #tpu.memory_space<vmem>>, vector<4x64xf32>
    %c0_1 = arith.constant 0 : index
    %c0_2 = arith.constant 0 : index
    %1 = vector.load %arg5[%c0_1, %c0_2] : memref<1x64xf32, #tpu.memory_space<vmem>>, vector<1x64xf32>
    %c0_3 = arith.constant 0 : index
    %c0_4 = arith.constant 0 : index
    %c0_5 = arith.constant 0 : index
    %2 = vector.load %arg3[%c0_3, %c0_4, %c0_5] : memref<8x32x4xf32, #tpu.memory_space<vmem>>, vector<1x32x4xf32>
    %3 = vector.shape_cast %2 : vector<1x32x4xf32> to vector<32x4xf32>
    %cst = arith.constant dense<0.000000e+00> : vector<32x64xf32>
    %4 = tpu.matmul %3, %0, %cst {dimension_numbers = #tpu.dot_dimension_numbers<[1], [0], [0], [1], [0, 0, 1, 1], [], []>} : vector<32x4xf32>, vector<4x64xf32>, vector<32x64xf32> -> vector<32x64xf32>
    %c0_6 = arith.constant 0 : index
    %c0_7 = arith.constant 0 : index
    %c0_8 = arith.constant 0 : index
    %5 = vector.load %arg1[%c0_6, %c0_7, %c0_8] : memref<8x32x32xf32, #tpu.memory_space<vmem>>, vector<1x32x32xf32>
    %6 = vector.shape_cast %5 : vector<1x32x32xf32> to vector<32x32xf32>
    %cst_9 = arith.constant dense<0.000000e+00> : vector<32x64xf32>
    %7 = tpu.matmul %6, %4, %cst_9 {dimension_numbers = #tpu.dot_dimension_numbers<[1], [0], [0], [1], [0, 0, 1, 1], [], []>} : vector<32x32xf32>, vector<32x64xf32>, vector<32x64xf32> -> vector<32x64xf32>
    %8 = vector.broadcast %1 : vector<1x64xf32> to vector<32x64xf32>
    %9 = arith.addf %7, %8 : vector<32x64xf32>
    %cst_10 = arith.constant 0.000000e+00 : f32
    %10 = vector.broadcast %cst_10 : f32 to vector<32x64xf32>
    %11 = arith.maximumf %9, %10 : vector<32x64xf32>
    %c0_11 = arith.constant 0 : index
    %c0_12 = arith.constant 0 : index
    %c0_13 = arith.constant 0 : index
    %12 = vector.load %arg2[%c0_11, %c0_12, %c0_13] : memref<8x1x32xf32, #tpu.memory_space<vmem>>, vector<1x1x32xf32>
    %13 = vector.shape_cast %12 : vector<1x1x32xf32> to vector<1x32xf32>
    %cst_14 = arith.constant dense<0.000000e+00> : vector<1x64xf32>
    %14 = tpu.matmul %13, %11, %cst_14 {dimension_numbers = #tpu.dot_dimension_numbers<[1], [0], [0], [1], [0, 0, 1, 1], [], []>} : vector<1x32xf32>, vector<32x64xf32>, vector<1x64xf32> -> vector<1x64xf32>
    %c0_15 = arith.constant 0 : index
    %c0_16 = arith.constant 0 : index
    %15 = vector.load %arg9[%c0_15, %c0_16] : memref<8x64xf32, #tpu.memory_space<vmem>>, vector<1x64xf32>
    tpu.vector_store %arg9[%c0_15, %c0_16], %14 {strides = array<i32>} : memref<8x64xf32, #tpu.memory_space<vmem>>, vector<1x64xf32>,
    %c1 = arith.constant 1 : index
    %c0_17 = arith.constant 0 : index
    %c0_18 = arith.constant 0 : index
    %16 = vector.load %arg3[%c1, %c0_17, %c0_18] : memref<8x32x4xf32, #tpu.memory_space<vmem>>, vector<1x32x4xf32>
    %17 = vector.shape_cast %16 : vector<1x32x4xf32> to vector<32x4xf32>
    %cst_19 = arith.constant dense<0.000000e+00> : vector<32x64xf32>
    %18 = tpu.matmul %17, %0, %cst_19 {dimension_numbers = #tpu.dot_dimension_numbers<[1], [0], [0], [1], [0, 0, 1, 1], [], []>} : vector<32x4xf32>, vector<4x64xf32>, vector<32x64xf32> -> vector<32x64xf32>
    %c1_20 = arith.constant 1 : index
    %c0_21 = arith.constant 0 : index
    %c0_22 = arith.constant 0 : index
    %19 = vector.load %arg1[%c1_20, %c0_21, %c0_22] : memref<8x32x32xf32, #tpu.memory_space<vmem>>, vector<1x32x32xf32>
    %20 = vector.shape_cast %19 : vector<1x32x32xf32> to vector<32x32xf32>
    %cst_23 = arith.constant dense<0.000000e+00> : vector<32x64xf32>
    %21 = tpu.matmul %20, %18, %cst_23 {dimension_numbers = #tpu.dot_dimension_numbers<[1], [0], [0], [1], [0, 0, 1, 1], [], []>} : vector<32x32xf32>, vector<32x64xf32>, vector<32x64xf32> -> vector<32x64xf32>
    %22 = vector.broadcast %1 : vector<1x64xf32> to vector<32x64xf32>
    %23 = arith.addf %21, %22 : vector<32x64xf32>
    %cst_24 = arith.constant 0.000000e+00 : f32
    %24 = vector.broadcast %cst_24 : f32 to vector<32x64xf32>
    %25 = arith.maximumf %23, %24 : vector<32x64xf32>
    %c1_25 = arith.constant 1 : index
    %c0_26 = arith.constant 0 : index
    %c0_27 = arith.constant 0 : index
    %26 = vector.load %arg2[%c1_25, %c0_26, %c0_27] : memref<8x1x32xf32, #tpu.memory_space<vmem>>, vector<1x1x32xf32>
    %27 = vector.shape_cast %26 : vector<1x1x32xf32> to vector<1x32xf32>
    %cst_28 = arith.constant dense<0.000000e+00> : vector<1x64xf32>
    %28 = tpu.matmul %27, %25, %cst_28 {dimension_numbers = #tpu.dot_dimension_numbers<[1], [0], [0], [1], [0, 0, 1, 1], [], []>} : vector<1x32xf32>, vector<32x64xf32>, vector<1x64xf32> -> vector<1x64xf32>
    %c1_29 = arith.constant 1 : index
    %c0_30 = arith.constant 0 : index
    %29 = vector.load %arg9[%c1_29, %c0_30] : memref<8x64xf32, #tpu.memory_space<vmem>>, vector<1x64xf32>
    tpu.vector_store %arg9[%c1_29, %c0_30], %28 {strides = array<i32>} : memref<8x64xf32, #tpu.memory_space<vmem>>, vector<1x64xf32>,
    %c2 = arith.constant 2 : index
    %c0_31 = arith.constant 0 : index
    %c0_32 = arith.constant 0 : index
    %30 = vector.load %arg3[%c2, %c0_31, %c0_32] : memref<8x32x4xf32, #tpu.memory_space<vmem>>, vector<1x32x4xf32>
    %31 = vector.shape_cast %30 : vector<1x32x4xf32> to vector<32x4xf32>
    %cst_33 = arith.constant dense<0.000000e+00> : vector<32x64xf32>
    %32 = tpu.matmul %31, %0, %cst_33 {dimension_numbers = #tpu.dot_dimension_numbers<[1], [0], [0], [1], [0, 0, 1, 1], [], []>} : vector<32x4xf32>, vector<4x64xf32>, vector<32x64xf32> -> vector<32x64xf32>
    %c2_34 = arith.constant 2 : index
    %c0_35 = arith.constant 0 : index
    %c0_36 = arith.constant 0 : index
    %33 = vector.load %arg1[%c2_34, %c0_35, %c0_36] : memref<8x32x32xf32, #tpu.memory_space<vmem>>, vector<1x32x32xf32>
    %34 = vector.shape_cast %33 : vector<1x32x32xf32> to vector<32x32xf32>
    %cst_37 = arith.constant dense<0.000000e+00> : vector<32x64xf32>
    %35 = tpu.matmul %34, %32, %cst_37 {dimension_numbers = #tpu.dot_dimension_numbers<[1], [0], [0], [1], [0, 0, 1, 1], [], []>} : vector<32x32xf32>, vector<32x64xf32>, vector<32x64xf32> -> vector<32x64xf32>
    %36 = vector.broadcast %1 : vector<1x64xf32> to vector<32x64xf32>
    %37 = arith.addf %35, %36 : vector<32x64xf32>
    %cst_38 = arith.constant 0.000000e+00 : f32
    %38 = vector.broadcast %cst_38 : f32 to vector<32x64xf32>
    %39 = arith.maximumf %37, %38 : vector<32x64xf32>
    %c2_39 = arith.constant 2 : index
    %c0_40 = arith.constant 0 : index
    %c0_41 = arith.constant 0 : index
    %40 = vector.load %arg2[%c2_39, %c0_40, %c0_41] : memref<8x1x32xf32, #tpu.memory_space<vmem>>, vector<1x1x32xf32>
    %41 = vector.shape_cast %40 : vector<1x1x32xf32> to vector<1x32xf32>
    %cst_42 = arith.constant dense<0.000000e+00> : vector<1x64xf32>
    %42 = tpu.matmul %41, %39, %cst_42 {dimension_numbers = #tpu.dot_dimension_numbers<[1], [0], [0], [1], [0, 0, 1, 1], [], []>} : vector<1x32xf32>, vector<32x64xf32>, vector<1x64xf32> -> vector<1x64xf32>
    %c2_43 = arith.constant 2 : index
    %c0_44 = arith.constant 0 : index
    %43 = vector.load %arg9[%c2_43, %c0_44] : memref<8x64xf32, #tpu.memory_space<vmem>>, vector<1x64xf32>
    tpu.vector_store %arg9[%c2_43, %c0_44], %42 {strides = array<i32>} : memref<8x64xf32, #tpu.memory_space<vmem>>, vector<1x64xf32>,
    %c3 = arith.constant 3 : index
    %c0_45 = arith.constant 0 : index
    %c0_46 = arith.constant 0 : index
    %44 = vector.load %arg3[%c3, %c0_45, %c0_46] : memref<8x32x4xf32, #tpu.memory_space<vmem>>, vector<1x32x4xf32>
    %45 = vector.shape_cast %44 : vector<1x32x4xf32> to vector<32x4xf32>
    %cst_47 = arith.constant dense<0.000000e+00> : vector<32x64xf32>
    %46 = tpu.matmul %45, %0, %cst_47 {dimension_numbers = #tpu.dot_dimension_numbers<[1], [0], [0], [1], [0, 0, 1, 1], [], []>} : vector<32x4xf32>, vector<4x64xf32>, vector<32x64xf32> -> vector<32x64xf32>
    %c3_48 = arith.constant 3 : index
    %c0_49 = arith.constant 0 : index
    %c0_50 = arith.constant 0 : index
    %47 = vector.load %arg1[%c3_48, %c0_49, %c0_50] : memref<8x32x32xf32, #tpu.memory_space<vmem>>, vector<1x32x32xf32>
    %48 = vector.shape_cast %47 : vector<1x32x32xf32> to vector<32x32xf32>
    %cst_51 = arith.constant dense<0.000000e+00> : vector<32x64xf32>
    %49 = tpu.matmul %48, %46, %cst_51 {dimension_numbers = #tpu.dot_dimension_numbers<[1], [0], [0], [1], [0, 0, 1, 1], [], []>} : vector<32x32xf32>, vector<32x64xf32>, vector<32x64xf32> -> vector<32x64xf32>
    %50 = vector.broadcast %1 : vector<1x64xf32> to vector<32x64xf32>
    %51 = arith.addf %49, %50 : vector<32x64xf32>
    %cst_52 = arith.constant 0.000000e+00 : f32
    %52 = vector.broadcast %cst_52 : f32 to vector<32x64xf32>
    %53 = arith.maximumf %51, %52 : vector<32x64xf32>
    %c3_53 = arith.constant 3 : index
    %c0_54 = arith.constant 0 : index
    %c0_55 = arith.constant 0 : index
    %54 = vector.load %arg2[%c3_53, %c0_54, %c0_55] : memref<8x1x32xf32, #tpu.memory_space<vmem>>, vector<1x1x32xf32>
    %55 = vector.shape_cast %54 : vector<1x1x32xf32> to vector<1x32xf32>
    %cst_56 = arith.constant dense<0.000000e+00> : vector<1x64xf32>
    %56 = tpu.matmul %55, %53, %cst_56 {dimension_numbers = #tpu.dot_dimension_numbers<[1], [0], [0], [1], [0, 0, 1, 1], [], []>} : vector<1x32xf32>, vector<32x64xf32>, vector<1x64xf32> -> vector<1x64xf32>
    %c3_57 = arith.constant 3 : index
    %c0_58 = arith.constant 0 : index
    %57 = vector.load %arg9[%c3_57, %c0_58] : memref<8x64xf32, #tpu.memory_space<vmem>>, vector<1x64xf32>
    tpu.vector_store %arg9[%c3_57, %c0_58], %56 {strides = array<i32>} : memref<8x64xf32, #tpu.memory_space<vmem>>, vector<1x64xf32>,
    %c4 = arith.constant 4 : index
    %c0_59 = arith.constant 0 : index
    %c0_60 = arith.constant 0 : index
    %58 = vector.load %arg3[%c4, %c0_59, %c0_60] : memref<8x32x4xf32, #tpu.memory_space<vmem>>, vector<1x32x4xf32>
    %59 = vector.shape_cast %58 : vector<1x32x4xf32> to vector<32x4xf32>
    %cst_61 = arith.constant dense<0.000000e+00> : vector<32x64xf32>
    %60 = tpu.matmul %59, %0, %cst_61 {dimension_numbers = #tpu.dot_dimension_numbers<[1], [0], [0], [1], [0, 0, 1, 1], [], []>} : vector<32x4xf32>, vector<4x64xf32>, vector<32x64xf32> -> vector<32x64xf32>
    %c4_62 = arith.constant 4 : index
    %c0_63 = arith.constant 0 : index
    %c0_64 = arith.constant 0 : index
    %61 = vector.load %arg1[%c4_62, %c0_63, %c0_64] : memref<8x32x32xf32, #tpu.memory_space<vmem>>, vector<1x32x32xf32>
    %62 = vector.shape_cast %61 : vector<1x32x32xf32> to vector<32x32xf32>
    %cst_65 = arith.constant dense<0.000000e+00> : vector<32x64xf32>
    %63 = tpu.matmul %62, %60, %cst_65 {dimension_numbers = #tpu.dot_dimension_numbers<[1], [0], [0], [1], [0, 0, 1, 1], [], []>} : vector<32x32xf32>, vector<32x64xf32>, vector<32x64xf32> -> vector<32x64xf32>
    %64 = vector.broadcast %1 : vector<1x64xf32> to vector<32x64xf32>
    %65 = arith.addf %63, %64 : vector<32x64xf32>
    %cst_66 = arith.constant 0.000000e+00 : f32
    %66 = vector.broadcast %cst_66 : f32 to vector<32x64xf32>
    %67 = arith.maximumf %65, %66 : vector<32x64xf32>
    %c4_67 = arith.constant 4 : index
    %c0_68 = arith.constant 0 : index
    %c0_69 = arith.constant 0 : index
    %68 = vector.load %arg2[%c4_67, %c0_68, %c0_69] : memref<8x1x32xf32, #tpu.memory_space<vmem>>, vector<1x1x32xf32>
    %69 = vector.shape_cast %68 : vector<1x1x32xf32> to vector<1x32xf32>
    %cst_70 = arith.constant dense<0.000000e+00> : vector<1x64xf32>
    %70 = tpu.matmul %69, %67, %cst_70 {dimension_numbers = #tpu.dot_dimension_numbers<[1], [0], [0], [1], [0, 0, 1, 1], [], []>} : vector<1x32xf32>, vector<32x64xf32>, vector<1x64xf32> -> vector<1x64xf32>
    %c4_71 = arith.constant 4 : index
    %c0_72 = arith.constant 0 : index
    %71 = vector.load %arg9[%c4_71, %c0_72] : memref<8x64xf32, #tpu.memory_space<vmem>>, vector<1x64xf32>
    tpu.vector_store %arg9[%c4_71, %c0_72], %70 {strides = array<i32>} : memref<8x64xf32, #tpu.memory_space<vmem>>, vector<1x64xf32>,
    %c5 = arith.constant 5 : index
    %c0_73 = arith.constant 0 : index
    %c0_74 = arith.constant 0 : index
    %72 = vector.load %arg3[%c5, %c0_73, %c0_74] : memref<8x32x4xf32, #tpu.memory_space<vmem>>, vector<1x32x4xf32>
    %73 = vector.shape_cast %72 : vector<1x32x4xf32> to vector<32x4xf32>
    %cst_75 = arith.constant dense<0.000000e+00> : vector<32x64xf32>
    %74 = tpu.matmul %73, %0, %cst_75 {dimension_numbers = #tpu.dot_dimension_numbers<[1], [0], [0], [1], [0, 0, 1, 1], [], []>} : vector<32x4xf32>, vector<4x64xf32>, vector<32x64xf32> -> vector<32x64xf32>
    %c5_76 = arith.constant 5 : index
    %c0_77 = arith.constant 0 : index
    %c0_78 = arith.constant 0 : index
    %75 = vector.load %arg1[%c5_76, %c0_77, %c0_78] : memref<8x32x32xf32, #tpu.memory_space<vmem>>, vector<1x32x32xf32>
    %76 = vector.shape_cast %75 : vector<1x32x32xf32> to vector<32x32xf32>
    %cst_79 = arith.constant dense<0.000000e+00> : vector<32x64xf32>
    %77 = tpu.matmul %76, %74, %cst_79 {dimension_numbers = #tpu.dot_dimension_numbers<[1], [0], [0], [1], [0, 0, 1, 1], [], []>} : vector<32x32xf32>, vector<32x64xf32>, vector<32x64xf32> -> vector<32x64xf32>
    %78 = vector.broadcast %1 : vector<1x64xf32> to vector<32x64xf32>
    %79 = arith.addf %77, %78 : vector<32x64xf32>
    %cst_80 = arith.constant 0.000000e+00 : f32
    %80 = vector.broadcast %cst_80 : f32 to vector<32x64xf32>
    %81 = arith.maximumf %79, %80 : vector<32x64xf32>
    %c5_81 = arith.constant 5 : index
    %c0_82 = arith.constant 0 : index
    %c0_83 = arith.constant 0 : index
    %82 = vector.load %arg2[%c5_81, %c0_82, %c0_83] : memref<8x1x32xf32, #tpu.memory_space<vmem>>, vector<1x1x32xf32>
    %83 = vector.shape_cast %82 : vector<1x1x32xf32> to vector<1x32xf32>
    %cst_84 = arith.constant dense<0.000000e+00> : vector<1x64xf32>
    %84 = tpu.matmul %83, %81, %cst_84 {dimension_numbers = #tpu.dot_dimension_numbers<[1], [0], [0], [1], [0, 0, 1, 1], [], []>} : vector<1x32xf32>, vector<32x64xf32>, vector<1x64xf32> -> vector<1x64xf32>
    %c5_85 = arith.constant 5 : index
    %c0_86 = arith.constant 0 : index
    %85 = vector.load %arg9[%c5_85, %c0_86] : memref<8x64xf32, #tpu.memory_space<vmem>>, vector<1x64xf32>
    tpu.vector_store %arg9[%c5_85, %c0_86], %84 {strides = array<i32>} : memref<8x64xf32, #tpu.memory_space<vmem>>, vector<1x64xf32>,
    %c6 = arith.constant 6 : index
    %c0_87 = arith.constant 0 : index
    %c0_88 = arith.constant 0 : index
    %86 = vector.load %arg3[%c6, %c0_87, %c0_88] : memref<8x32x4xf32, #tpu.memory_space<vmem>>, vector<1x32x4xf32>
    %87 = vector.shape_cast %86 : vector<1x32x4xf32> to vector<32x4xf32>
    %cst_89 = arith.constant dense<0.000000e+00> : vector<32x64xf32>
    %88 = tpu.matmul %87, %0, %cst_89 {dimension_numbers = #tpu.dot_dimension_numbers<[1], [0], [0], [1], [0, 0, 1, 1], [], []>} : vector<32x4xf32>, vector<4x64xf32>, vector<32x64xf32> -> vector<32x64xf32>
    %c6_90 = arith.constant 6 : index
    %c0_91 = arith.constant 0 : index
    %c0_92 = arith.constant 0 : index
    %89 = vector.load %arg1[%c6_90, %c0_91, %c0_92] : memref<8x32x32xf32, #tpu.memory_space<vmem>>, vector<1x32x32xf32>
    %90 = vector.shape_cast %89 : vector<1x32x32xf32> to vector<32x32xf32>
    %cst_93 = arith.constant dense<0.000000e+00> : vector<32x64xf32>
    %91 = tpu.matmul %90, %88, %cst_93 {dimension_numbers = #tpu.dot_dimension_numbers<[1], [0], [0], [1], [0, 0, 1, 1], [], []>} : vector<32x32xf32>, vector<32x64xf32>, vector<32x64xf32> -> vector<32x64xf32>
    %92 = vector.broadcast %1 : vector<1x64xf32> to vector<32x64xf32>
    %93 = arith.addf %91, %92 : vector<32x64xf32>
    %cst_94 = arith.constant 0.000000e+00 : f32
    %94 = vector.broadcast %cst_94 : f32 to vector<32x64xf32>
    %95 = arith.maximumf %93, %94 : vector<32x64xf32>
    %c6_95 = arith.constant 6 : index
    %c0_96 = arith.constant 0 : index
    %c0_97 = arith.constant 0 : index
    %96 = vector.load %arg2[%c6_95, %c0_96, %c0_97] : memref<8x1x32xf32, #tpu.memory_space<vmem>>, vector<1x1x32xf32>
    %97 = vector.shape_cast %96 : vector<1x1x32xf32> to vector<1x32xf32>
    %cst_98 = arith.constant dense<0.000000e+00> : vector<1x64xf32>
    %98 = tpu.matmul %97, %95, %cst_98 {dimension_numbers = #tpu.dot_dimension_numbers<[1], [0], [0], [1], [0, 0, 1, 1], [], []>} : vector<1x32xf32>, vector<32x64xf32>, vector<1x64xf32> -> vector<1x64xf32>
    %c6_99 = arith.constant 6 : index
    %c0_100 = arith.constant 0 : index
    %99 = vector.load %arg9[%c6_99, %c0_100] : memref<8x64xf32, #tpu.memory_space<vmem>>, vector<1x64xf32>
    tpu.vector_store %arg9[%c6_99, %c0_100], %98 {strides = array<i32>} : memref<8x64xf32, #tpu.memory_space<vmem>>, vector<1x64xf32>,
    %c7 = arith.constant 7 : index
    %c0_101 = arith.constant 0 : index
    %c0_102 = arith.constant 0 : index
    %100 = vector.load %arg3[%c7, %c0_101, %c0_102] : memref<8x32x4xf32, #tpu.memory_space<vmem>>, vector<1x32x4xf32>
    %101 = vector.shape_cast %100 : vector<1x32x4xf32> to vector<32x4xf32>
    %cst_103 = arith.constant dense<0.000000e+00> : vector<32x64xf32>
    %102 = tpu.matmul %101, %0, %cst_103 {dimension_numbers = #tpu.dot_dimension_numbers<[1], [0], [0], [1], [0, 0, 1, 1], [], []>} : vector<32x4xf32>, vector<4x64xf32>, vector<32x64xf32> -> vector<32x64xf32>
    %c7_104 = arith.constant 7 : index
    %c0_105 = arith.constant 0 : index
    %c0_106 = arith.constant 0 : index
    %103 = vector.load %arg1[%c7_104, %c0_105, %c0_106] : memref<8x32x32xf32, #tpu.memory_space<vmem>>, vector<1x32x32xf32>
    %104 = vector.shape_cast %103 : vector<1x32x32xf32> to vector<32x32xf32>
    %cst_107 = arith.constant dense<0.000000e+00> : vector<32x64xf32>
    %105 = tpu.matmul %104, %102, %cst_107 {dimension_numbers = #tpu.dot_dimension_numbers<[1], [0], [0], [1], [0, 0, 1, 1], [], []>} : vector<32x32xf32>, vector<32x64xf32>, vector<32x64xf32> -> vector<32x64xf32>
    %106 = vector.broadcast %1 : vector<1x64xf32> to vector<32x64xf32>
    %107 = arith.addf %105, %106 : vector<32x64xf32>
    %cst_108 = arith.constant 0.000000e+00 : f32
    %108 = vector.broadcast %cst_108 : f32 to vector<32x64xf32>
    %109 = arith.maximumf %107, %108 : vector<32x64xf32>
    %c7_109 = arith.constant 7 : index
    %c0_110 = arith.constant 0 : index
    %c0_111 = arith.constant 0 : index
    %110 = vector.load %arg2[%c7_109, %c0_110, %c0_111] : memref<8x1x32xf32, #tpu.memory_space<vmem>>, vector<1x1x32xf32>
    %111 = vector.shape_cast %110 : vector<1x1x32xf32> to vector<1x32xf32>
    %cst_112 = arith.constant dense<0.000000e+00> : vector<1x64xf32>
    %112 = tpu.matmul %111, %109, %cst_112 {dimension_numbers = #tpu.dot_dimension_numbers<[1], [0], [0], [1], [0, 0, 1, 1], [], []>} : vector<1x32xf32>, vector<32x64xf32>, vector<1x64xf32> -> vector<1x64xf32>
    %c7_113 = arith.constant 7 : index
    %c0_114 = arith.constant 0 : index
    %113 = vector.load %arg9[%c7_113, %c0_114] : memref<8x64xf32, #tpu.memory_space<vmem>>, vector<1x64xf32>
    tpu.vector_store %arg9[%c7_113, %c0_114], %112 {strides = array<i32>} : memref<8x64xf32, #tpu.memory_space<vmem>>, vector<1x64xf32>,
    %c0_115 = arith.constant 0 : index
    %c0_116 = arith.constant 0 : index
    %114 = vector.load %arg9[%c0_115, %c0_116] : memref<8x64xf32, #tpu.memory_space<vmem>>, vector<8x64xf32>
    %c0_117 = arith.constant 0 : index
    %c0_118 = arith.constant 0 : index
    %115 = vector.load %arg6[%c0_117, %c0_118] : memref<64x128xf32, #tpu.memory_space<vmem>>, vector<64x128xf32>
    %cst_119 = arith.constant dense<0.000000e+00> : vector<8x128xf32>
    %116 = tpu.matmul %114, %115, %cst_119 {dimension_numbers = #tpu.dot_dimension_numbers<[1], [0], [0], [1], [0, 0, 1, 1], [], []>} : vector<8x64xf32>, vector<64x128xf32>, vector<8x128xf32> -> vector<8x128xf32>
    %c0_120 = arith.constant 0 : index
    %c0_121 = arith.constant 0 : index
    %117 = vector.load %arg7[%c0_120, %c0_121] : memref<8x128xf32, #tpu.memory_space<vmem>>, vector<8x128xf32>
    %118 = arith.addf %116, %117 : vector<8x128xf32>
    %c0_122 = arith.constant 0 : index
    %c0_123 = arith.constant 0 : index
    %119 = vector.load %arg8[%c0_122, %c0_123] : memref<8x128xf32, #tpu.memory_space<vmem>>, vector<8x128xf32>
    tpu.vector_store %arg8[%c0_122, %c0_123], %118 {strides = array<i32>} : memref<8x128xf32, #tpu.memory_space<vmem>>, vector<8x128xf32>,
    return
  }
  func.func @transform_0(%arg0: i32) -> (i32, i32, i32) {
    %c0_i32 = arith.constant 0 : i32
    %c0_i32_0 = arith.constant 0 : i32
    %c0_i32_1 = arith.constant 0 : i32
    return %arg0, %c0_i32, %c0_i32_0 : i32, i32, i32
  }
  func.func @transform_1(%arg0: i32) -> (i32, i32, i32) {
    %c0_i32 = arith.constant 0 : i32
    %c0_i32_0 = arith.constant 0 : i32
    %c0_i32_1 = arith.constant 0 : i32
    return %arg0, %c0_i32, %c0_i32_0 : i32, i32, i32
  }
  func.func @transform_2(%arg0: i32) -> (i32, i32, i32) {
    %c0_i32 = arith.constant 0 : i32
    %c0_i32_0 = arith.constant 0 : i32
    %c0_i32_1 = arith.constant 0 : i32
    return %arg0, %c0_i32, %c0_i32_0 : i32, i32, i32
  }
  func.func @transform_3(%arg0: i32) -> (i32, i32) {
    %c0_i32 = arith.constant 0 : i32
    %c0_i32_0 = arith.constant 0 : i32
    %c0_i32_1 = arith.constant 0 : i32
    return %c0_i32, %c0_i32_0 : i32, i32
  }
  func.func @transform_4(%arg0: i32) -> (i32, i32) {
    %c0_i32 = arith.constant 0 : i32
    %c0_i32_0 = arith.constant 0 : i32
    %c0_i32_1 = arith.constant 0 : i32
    return %c0_i32, %c0_i32_0 : i32, i32
  }
  func.func @transform_5(%arg0: i32) -> (i32, i32) {
    %c0_i32 = arith.constant 0 : i32
    %c0_i32_0 = arith.constant 0 : i32
    %c0_i32_1 = arith.constant 0 : i32
    return %c0_i32, %c0_i32_0 : i32, i32
  }
  func.func @transform_6(%arg0: i32) -> (i32, i32) {
    %c0_i32 = arith.constant 0 : i32
    %c0_i32_0 = arith.constant 0 : i32
    return %arg0, %c0_i32 : i32, i32
  }
  func.func @transform_7(%arg0: i32) -> (i32, i32) {
    %c0_i32 = arith.constant 0 : i32
    %c0_i32_0 = arith.constant 0 : i32
    return %arg0, %c0_i32 : i32, i32
  }
}

</mosaic_0001>

<bundles_post_ra>
// kernel: gnn_forward.1
= control target key start
LH: loop header
LB: loop body
LE: loop exit
PB: predicated region body
PF: predicated region fallthrough
CT: control target
= control target key end

     0   :  { %vm46_vm0 = vcmask 1043456   ;;  %vm33_vm1 = vcmask 31744   ;;  %s3634_s0 = inlined_call_operand.vmem [shape: f32[8,32,32], index: 0, kind: input, shape index: {}]   ;;  %s3635_s1 = inlined_call_operand.vmem [shape: f32[8,1,32], index: 1, kind: input, shape index: {}]   ;;  %s3636_s2 = inlined_call_operand.vmem [shape: f32[8,32,4], index: 2, kind: input, shape index: {}]   ;;  %s3637_s3 = inlined_call_operand.vmem [shape: f32[4,64], index: 3, kind: input, shape index: {}]   ;;  %s3638_s4 = inlined_call_operand.vmem [shape: f32[1,64], index: 4, kind: input, shape index: {}]   ;;  %s3639_s5 = inlined_call_operand.vmem [shape: f32[64,128], index: 5, kind: input, shape index: {}]   ;;  %s3640_s6 = inlined_call_operand.vmem [shape: f32[8,128], index: 6, kind: input, shape index: {}]   ;;  %s3641_s7 = inlined_call_operand.hbm [shape: f32[8,128], index: 7, kind: output, shape index: {}]  }
   0x1   :  { %v3190_v0 = vld [vmem:[%s3637_s3] sm:$0xf]  ;;  %v30_v2 = vld [vmem:[%s3636_s2 + $0x8] sm:$0xff]  ;;  %v31_v3 = vld [vmem:[%s3636_s2 + $0x10] sm:$0xff] }
   0x2   :  { %v29_v1 = vld [vmem:[%s3636_s2] sm:$0xff]  ;;  %2708 = vmatprep.subr.msk.mxu0 %vm46_vm0, %v3190_v0 }
   0x3   :  { %2710 = vmatprep.mubr.msk.f32.mxu0 %vm33_vm1, %v29_v1 }
   0x4   :  { %12 = vsyncpa [#allocation4], 0  ;;  %2709 = vmatpush3.msk.msra.mxu0 %vm46_vm0, %v3190_v0  ;;  %v32_v4 = vld [vmem:[%s3636_s2 + $0x18] sm:$0xff]  ;;  %v135_v5 = vld [vmem:[%s3634_s0] sm:$0xff]  ;;  %vm145_vm2 = vcmask 261120   ;;  %v3143_v15 = vmov 0.0|0.0  }
   0x5   :  { %2711 = vmatmul.mubr.msk.f32.vlgmr.msra.gmra.mrb[0].mxu0 %vm33_vm1, %v30_v2  ;;  %2724 = vmatprep.mubr.msk.f32.mxu1 %vm145_vm2, %v135_v5  ;;  %v136_v12 = vld [vmem:[%s3634_s0 + $0x8] sm:$0xff]  ;;  %v137_v13 = vld [vmem:[%s3634_s0 + $0x10] sm:$0xff]  ;;  %v138_v14 = vld [vmem:[%s3634_s0 + $0x18] sm:$0xff]  ;;  %vm3144_vm3 = vmmov 0   ;;  %v3145_v16 = vmov 0.0   ;;  %vm321_vm4 = vcmask 516096  }
   0x6   :  { %2713 = vmatprep.mubr.msk.f32.mxu0 %vm33_vm1, %v31_v3  ;;  %2999 = vmatprep.subr.bf16.mxu0 %v3143_v15  ;;  %v3234_v17 = vld [vmem:[%s3638_s4] ss:$0 sm:$0xff]  ;;  %v2422_v34 = vld [vmem:[%s3636_s2 + $0x28] sm:$0xff]  ;;  %v2423_v35 = vld [vmem:[%s3636_s2 + $0x30] sm:$0xff]  ;;  %vm2321_vm5 = vcmask 523264   ;;  %s3146_s13 = smov [#allocation3]  }
   0x7   :  { %v247_v32 = vld [vmem:[%s3635_s1] sm:$0x1]  ;;  %v2424_v36 = vld [vmem:[%s3636_s2 + $0x38] sm:$0xff]  ;;  %v2431_v46 = vld [vmem:[%s3634_s0 + $0x28] sm:$0xff]  ;;  %s2402_s14 = sshll.u32 %s3146_s13, 4  ;;  %s2403_s14 = int_to_ptr.vmem [resolvable:$true] %s2402_s14 }
   0x8   :  { %v2421_v33 = vld [vmem:[%s3636_s2 + $0x20] sm:$0xff]  ;;  %v2432_v47 = vld [vmem:[%s3634_s0 + $0x30] sm:$0xff]  ;;  %v2433_v48 = vld [vmem:[%s3634_s0 + $0x38] sm:$0xff]  ;;  %p3124_p1 = scmp.lt.s32.totalorder %s2403_s14, %s2403_s14 }
   0x9   :  { %2714 = vmatmul.mubr.msk.f32.gmra.mrb[2].mxu0 %vm33_vm1, %v32_v4  ;;  %v2430_v37 = vld [vmem:[%s3634_s0 + $0x20] sm:$0xff]  ;;  %v2441_v2 = vld [vmem:[%s3636_s2 + $0x48] sm:$0xff]  ;;  %v2442_v3 = vld [vmem:[%s3636_s2 + $0x50] sm:$0xff] }
   0xa   :  { %2738 = vmatprep.mubr.msk.f32.mxu0 %vm3144_vm3, %v3145_v16  ;;  %v2438_v63 = vld [vmem:[%s3635_s1 + $0x1] sm:$0x1]  ;;  %v2443_v4 = vld [vmem:[%s3636_s2 + $0x58] sm:$0xff] }
   0xb   :  { %v2440_v1 = vld [vmem:[%s3636_s2 + $0x40] sm:$0xff] }
   0xc   :  { %v2449_v5 = vld [vmem:[%s3634_s0 + $0x40] sm:$0xff] }
  0xd8   :  { %v2712_v6 = vpop.f32.mrb[0].mxu0 }
  0xd9   :  { %v116_v7 = vpop.f32.mrb[1].mxu0 }
  0xda   :  { %v2991_v8 = vpack.c.bf16 %v2712_v6, %v116_v7 }
  0xdc   :  { %v2715_v9 = vpop.f32.mrb[2].mxu0  ;;  %2992 = vmatprep.subr.bf16.mxu1 %v2991_v8 }
  0xdd   :  { %v126_v10 = vpop.f32.mrb[3].mxu0  ;;  %2994 = vmatpush3.bf16.msra.mxu1 %v2991_v8 }
  0xde   :  { %v2995_v11 = vpack.c.bf16 %v2715_v9, %v126_v10 }
  0xe0   :  { %2996 = vmatprep.subr.bf16.mxu1 %v2995_v11 }
  0xe1   :  { %2998 = vmatpush3.bf16.msra.mxu1 %v2995_v11 }
  0xe4   :  { %2725 = vmatmul.mubr.msk.f32.vlgmr.msra.gmra.mrb[0].mxu1 %vm145_vm2, %v136_v12 }
  0xe5   :  { %2727 = vmatprep.mubr.msk.f32.mxu1 %vm145_vm2, %v137_v13 }
  0xe8   :  { %2728 = vmatmul.mubr.msk.f32.gmra.mrb[2].mxu1 %vm145_vm2, %v138_v14  ;;  %v2450_v14 = vld [vmem:[%s3634_s0 + $0x48] sm:$0xff] }
  0xe9   :  { %2757 = vmatprep.mubr.msk.f32.mxu1 %vm145_vm2, %v2430_v37  ;;  %v2461_v37 = vld [vmem:[%s3636_s2 + $0x70] sm:$0xff] }
 0x1b7   :  { %v2726_v18 = vpop.f32.mrb[0].mxu1 }
 0x1b8   :  { %v230_v19 = vadd.f32 %v2726_v18, %v3234_v17  ;;  %v224_v20 = vpop.f32.mrb[1].mxu1  ;;  %v2451_v18 = vld [vmem:[%s3634_s0 + $0x50] sm:$0xff] }
 0x1b9   :  { %v225_v21 = vadd.f32 %v3234_v17, %v224_v20 }
 0x1ba   :  { %v244_v22 = vmax.f32 %v230_v19, 0.0  ;;  %v2452_v19 = vld [vmem:[%s3634_s0 + $0x58] sm:$0xff] }
 0x1bb   :  { %v243_v23 = vmax.f32 %v225_v21, 0.0  ;;  %v2729_v24 = vpop.f32.mrb[2].mxu1 }
 0x1bc   :  { %v240_v25 = vadd.f32 %v2729_v24, %v3234_v17  ;;  %v234_v26 = vpop.f32.mrb[3].mxu1 }
 0x1bd   :  { %v3000_v27 = vpack.c.bf16 %v244_v22, %v243_v23  ;;  %v235_v28 = vadd.f32 %v3234_v17, %v234_v26 }
 0x1be   :  { %v246_v29 = vmax.f32 %v240_v25, 0.0 }
 0x1bf   :  { %v245_v30 = vmax.f32 %v235_v28, 0.0  ;;  %3001 = vmatpush3.bf16.msra.mxu0 %v3000_v27 }
 0x1c0   :  { %3002 = vmatprep.subr.bf16.mxu0 %v3143_v15 }
 0x1c1   :  { %v3003_v31 = vpack.c.bf16 %v246_v29, %v245_v30 }
 0x1c3   :  { %3004 = vmatpush3.bf16.msra.mxu0 %v3003_v31 }
 0x1c4   :  { %2741 = vmatprep.subr.msk.mxu0 %vm46_vm0, %v3190_v0 }
 0x1c6   :  { %2739 = vmatmul.mubr.msk.f32.vlgmr.msra.gmra.mrb[4].mxu0 %vm145_vm2, %v247_v32 }
 0x1c7   :  { %2742 = vmatpush3.msk.msra.mxu0 %vm46_vm0, %v3190_v0  ;;  %2743 = vmatprep.mubr.msk.f32.mxu0 %vm33_vm1, %v2421_v33 }
 0x1ca   :  { %2744 = vmatmul.mubr.msk.f32.vlgmr.msra.gmra.mrb[6].mxu0 %vm33_vm1, %v2422_v34  ;;  %v2457_v34 = vld [vmem:[%s3635_s1 + $0x2] sm:$0x1] }
 0x1cb   :  { %2746 = vmatprep.mubr.msk.f32.mxu0 %vm33_vm1, %v2423_v35  ;;  %v2459_v35 = vld [vmem:[%s3636_s2 + $0x60] sm:$0xff] }
 0x1ce   :  { %2747 = vmatmul.mubr.msk.f32.gmra.mrb[8].mxu0 %vm33_vm1, %v2424_v36  ;;  %v2460_v36 = vld [vmem:[%s3636_s2 + $0x68] sm:$0xff] }
 0x1cf   :  { %2790 = vmatprep.mubr.msk.f32.mxu0 %vm145_vm2, %v2449_v5 }
 0x299   :  { %v317_v38 = vpop.f32.mrb[4].mxu0 }
 0x29a   :  { %322 = vst.msk [vmem:[#allocation2] sm:$0x1] %vm321_vm4, %v317_v38  ;;  %v2740_v39 = vpop.f32.mrb[5].mxu0  ;;  %v2462_v38 = vld [vmem:[%s3636_s2 + $0x78] sm:$0xff] }
 0x29b   :  { %v2468_v39 = vld [vmem:[%s3634_s0 + $0x60] sm:$0xff] }
 0x29d   :  { %v2745_v40 = vpop.f32.mrb[6].mxu0 }
 0x29e   :  { %v406_v41 = vpop.f32.mrb[7].mxu0 }
 0x29f   :  { %v3005_v42 = vpack.c.bf16 %v2745_v40, %v406_v41 }
 0x2a1   :  { %v2748_v43 = vpop.f32.mrb[8].mxu0  ;;  %3006 = vmatprep.subr.bf16.mxu1 %v3005_v42 }
 0x2a2   :  { %v416_v44 = vpop.f32.mrb[9].mxu0  ;;  %3008 = vmatpush3.bf16.msra.mxu1 %v3005_v42 }
 0x2a3   :  { %v3009_v45 = vpack.c.bf16 %v2748_v43, %v416_v44 }
 0x2a5   :  { %3010 = vmatprep.subr.bf16.mxu1 %v3009_v45 }
 0x2a6   :  { %3012 = vmatpush3.bf16.msra.mxu1 %v3009_v45 }
 0x2a7   :  { %3013 = vmatprep.subr.bf16.mxu1 %v3143_v15 }
 0x2a9   :  { %2758 = vmatmul.mubr.msk.f32.vlgmr.msra.gmra.mrb[4].mxu1 %vm145_vm2, %v2431_v46 }
 0x2aa   :  { %2760 = vmatprep.mubr.msk.f32.mxu1 %vm145_vm2, %v2432_v47 }
 0x2ad   :  { %2761 = vmatmul.mubr.msk.f32.gmra.mrb[6].mxu1 %vm145_vm2, %v2433_v48  ;;  %v2469_v48 = vld [vmem:[%s3634_s0 + $0x68] sm:$0xff] }
 0x2ae   :  { %2771 = vmatprep.mubr.msk.f32.mxu1 %vm3144_vm3, %v3145_v16 }
 0x37c   :  { %v2759_v49 = vpop.f32.mrb[4].mxu1 }
 0x37d   :  { %v514_v50 = vadd.f32 %v2759_v49, %v3234_v17  ;;  %v508_v51 = vpop.f32.mrb[5].mxu1  ;;  %v2470_v49 = vld [vmem:[%s3634_s0 + $0x70] sm:$0xff] }
 0x37e   :  { %v509_v52 = vadd.f32 %v3234_v17, %v508_v51  ;;  %v2478_v51 = vld [vmem:[%s3636_s2 + $0x80] sm:$0xff] }
 0x37f   :  { %v528_v53 = vmax.f32 %v514_v50, 0.0  ;;  %v2471_v50 = vld [vmem:[%s3634_s0 + $0x78] sm:$0xff] }
 0x380   :  { %v527_v54 = vmax.f32 %v509_v52, 0.0  ;;  %v2762_v55 = vpop.f32.mrb[6].mxu1  ;;  %v2479_v52 = vld [vmem:[%s3636_s2 + $0x88] sm:$0xff] }
 0x381   :  { %v524_v56 = vadd.f32 %v2762_v55, %v3234_v17  ;;  %v518_v57 = vpop.f32.mrb[7].mxu1 }
 0x382   :  { %v3014_v58 = vpack.c.bf16 %v528_v53, %v527_v54  ;;  %v519_v59 = vadd.f32 %v3234_v17, %v518_v57  ;;  %v2480_v53 = vld [vmem:[%s3636_s2 + $0x90] sm:$0xff]  ;;  %v2481_v54 = vld [vmem:[%s3636_s2 + $0x98] sm:$0xff] }
 0x383   :  { %v530_v60 = vmax.f32 %v524_v56, 0.0 }
 0x384   :  { %v529_v61 = vmax.f32 %v519_v59, 0.0  ;;  %3015 = vmatpush3.bf16.msra.mxu1 %v3014_v58 }
 0x385   :  { %3016 = vmatprep.subr.bf16.mxu1 %v3143_v15 }
 0x386   :  { %v3017_v62 = vpack.c.bf16 %v530_v60, %v529_v61 }
 0x388   :  { %3018 = vmatpush3.bf16.msra.mxu1 %v3017_v62 }
 0x389   :  { %2774 = vmatprep.subr.msk.mxu1 %vm46_vm0, %v3190_v0 }
 0x38b   :  { %2772 = vmatmul.mubr.msk.f32.vlgmr.msra.gmra.mrb[8].mxu1 %vm145_vm2, %v2438_v63 }
 0x38c   :  { %2775 = vmatpush3.msk.msra.mxu1 %vm46_vm0, %v3190_v0  ;;  %2776 = vmatprep.mubr.msk.f32.mxu1 %vm33_vm1, %v2440_v1 }
 0x38d   :  { %3027 = vmatprep.subr.bf16.mxu1 %v3143_v15 }
 0x38f   :  { %2777 = vmatmul.mubr.msk.f32.vlgmr.msra.gmra.mrb[10].mxu1 %vm33_vm1, %v2441_v2 }
 0x390   :  { %2779 = vmatprep.mubr.msk.f32.mxu1 %vm33_vm1, %v2442_v3 }
 0x393   :  { %2780 = vmatmul.mubr.msk.f32.gmra.mrb[12].mxu1 %vm33_vm1, %v2443_v4 }
 0x394   :  { %2804 = vmatprep.mubr.msk.f32.mxu1 %vm3144_vm3, %v3145_v16 }
 0x45e   :  { %v602_v6 = vpop.f32.mrb[8].mxu1 }
 0x45f   :  { %606 = vst.msk [vmem:[#allocation2 + $0x1] sm:$0x1] %vm321_vm4, %v602_v6  ;;  %v2773_v7 = vpop.f32.mrb[9].mxu1 }
 0x462   :  { %v2778_v8 = vpop.f32.mrb[10].mxu1 }
 0x463   :  { %v690_v9 = vpop.f32.mrb[11].mxu1 }
 0x464   :  { %v3019_v10 = vpack.c.bf16 %v2778_v8, %v690_v9 }
 0x466   :  { %v2781_v11 = vpop.f32.mrb[12].mxu1  ;;  %3020 = vmatprep.subr.bf16.mxu0 %v3019_v10 }
 0x467   :  { %v700_v12 = vpop.f32.mrb[13].mxu1  ;;  %3022 = vmatpush3.bf16.msra.mxu0 %v3019_v10  ;;  %v2476_v10 = vld [vmem:[%s3635_s1 + $0x3] sm:$0x1] }
 0x468   :  { %v3023_v13 = vpack.c.bf16 %v2781_v11, %v700_v12  ;;  %v2487_v12 = vld [vmem:[%s3634_s0 + $0x80] sm:$0xff] }
 0x46a   :  { %3024 = vmatprep.subr.bf16.mxu0 %v3023_v13 }
 0x46b   :  { %3026 = vmatpush3.bf16.msra.mxu0 %v3023_v13 }
 0x46e   :  { %2791 = vmatmul.mubr.msk.f32.vlgmr.msra.gmra.mrb[10].mxu0 %vm145_vm2, %v2450_v14  ;;  %v2488_v14 = vld [vmem:[%s3634_s0 + $0x88] sm:$0xff] }
 0x46f   :  { %2793 = vmatprep.mubr.msk.f32.mxu0 %vm145_vm2, %v2451_v18  ;;  %v2489_v18 = vld [vmem:[%s3634_s0 + $0x90] sm:$0xff] }
 0x472   :  { %2794 = vmatmul.mubr.msk.f32.gmra.mrb[12].mxu0 %vm145_vm2, %v2452_v19  ;;  %v2490_v19 = vld [vmem:[%s3634_s0 + $0x98] sm:$0xff] }
 0x473   :  { %2823 = vmatprep.mubr.msk.f32.mxu0 %vm145_vm2, %v2468_v39  ;;  %v2499_v39 = vld [vmem:[%s3636_s2 + $0xb0] sm:$0xff] }
 0x541   :  { %v2792_v20 = vpop.f32.mrb[10].mxu0 }
 0x542   :  { %v798_v21 = vadd.f32 %v2792_v20, %v3234_v17  ;;  %v792_v22 = vpop.f32.mrb[11].mxu0 }
 0x543   :  { %v793_v23 = vadd.f32 %v3234_v17, %v792_v22 }
 0x544   :  { %v812_v24 = vmax.f32 %v798_v21, 0.0 }
 0x545   :  { %v811_v25 = vmax.f32 %v793_v23, 0.0  ;;  %v2795_v26 = vpop.f32.mrb[12].mxu0 }
 0x546   :  { %v808_v27 = vadd.f32 %v2795_v26, %v3234_v17  ;;  %v802_v28 = vpop.f32.mrb[13].mxu0 }
 0x547   :  { %v3028_v29 = vpack.c.bf16 %v812_v24, %v811_v25  ;;  %v803_v30 = vadd.f32 %v3234_v17, %v802_v28 }
 0x548   :  { %v814_v31 = vmax.f32 %v808_v27, 0.0 }
 0x549   :  { %v813_v32 = vmax.f32 %v803_v30, 0.0  ;;  %3029 = vmatpush3.bf16.msra.mxu1 %v3028_v29 }
 0x54a   :  { %3030 = vmatprep.subr.bf16.mxu1 %v3143_v15 }
 0x54b   :  { %v3031_v33 = vpack.c.bf16 %v814_v31, %v813_v32 }
 0x54d   :  { %3032 = vmatpush3.bf16.msra.mxu1 %v3031_v33 }
 0x54e   :  { %2807 = vmatprep.subr.msk.mxu1 %vm46_vm0, %v3190_v0 }
 0x550   :  { %2805 = vmatmul.mubr.msk.f32.vlgmr.msra.gmra.mrb[14].mxu1 %vm145_vm2, %v2457_v34 }
 0x551   :  { %2808 = vmatpush3.msk.msra.mxu1 %vm46_vm0, %v3190_v0  ;;  %2809 = vmatprep.mubr.msk.f32.mxu1 %vm33_vm1, %v2459_v35 }
 0x552   :  { %3041 = vmatprep.subr.bf16.mxu1 %v3143_v15 }
 0x554   :  { %2810 = vmatmul.mubr.msk.f32.vlgmr.msra.gmra.mrb[16].mxu1 %vm33_vm1, %v2460_v36  ;;  %v2495_v36 = vld [vmem:[%s3635_s1 + $0x4] sm:$0x1] }
 0x555   :  { %2812 = vmatprep.mubr.msk.f32.mxu1 %vm33_vm1, %v2461_v37  ;;  %v2497_v37 = vld [vmem:[%s3636_s2 + $0xa0] sm:$0xff] }
 0x558   :  { %2813 = vmatmul.mubr.msk.f32.gmra.mrb[18].mxu1 %vm33_vm1, %v2462_v38  ;;  %v2498_v38 = vld [vmem:[%s3636_s2 + $0xa8] sm:$0xff] }
 0x559   :  { %2837 = vmatprep.mubr.msk.f32.mxu1 %vm3144_vm3, %v3145_v16 }
 0x623   :  { %v886_v40 = vpop.f32.mrb[14].mxu1 }
 0x624   :  { %890 = vst.msk [vmem:[#allocation2 + $0x2] sm:$0x1] %vm321_vm4, %v886_v40  ;;  %v2806_v41 = vpop.f32.mrb[15].mxu1  ;;  %v2500_v40 = vld [vmem:[%s3636_s2 + $0xb8] sm:$0xff] }
 0x625   :  { %v2506_v41 = vld [vmem:[%s3634_s0 + $0xa0] sm:$0xff] }
 0x627   :  { %v2811_v42 = vpop.f32.mrb[16].mxu1 }
 0x628   :  { %v974_v43 = vpop.f32.mrb[17].mxu1 }
 0x629   :  { %v3033_v44 = vpack.c.bf16 %v2811_v42, %v974_v43 }
 0x62b   :  { %v2814_v45 = vpop.f32.mrb[18].mxu1  ;;  %3034 = vmatprep.subr.bf16.mxu0 %v3033_v44 }
 0x62c   :  { %v984_v46 = vpop.f32.mrb[19].mxu1  ;;  %3036 = vmatpush3.bf16.msra.mxu0 %v3033_v44 }
 0x62d   :  { %v3037_v47 = vpack.c.bf16 %v2814_v45, %v984_v46 }
 0x62f   :  { %3038 = vmatprep.subr.bf16.mxu0 %v3037_v47 }
 0x630   :  { %3040 = vmatpush3.bf16.msra.mxu0 %v3037_v47 }
 0x631   :  { %2840 = vmatprep.subr.msk.mxu0 %vm46_vm0, %v3190_v0 }
 0x633   :  { %2824 = vmatmul.mubr.msk.f32.vlgmr.msra.gmra.mrb[14].mxu0 %vm145_vm2, %v2469_v48 }
 0x634   :  { %2826 = vmatprep.mubr.msk.f32.mxu0 %vm145_vm2, %v2470_v49  ;;  %2841 = vmatpush3.msk.msra.mxu0 %vm46_vm0, %v3190_v0 }
 0x635   :  { %3055 = vmatprep.subr.bf16.mxu0 %v3143_v15 }
 0x637   :  { %2827 = vmatmul.mubr.msk.f32.gmra.mrb[16].mxu0 %vm145_vm2, %v2471_v50  ;;  %v2507_v50 = vld [vmem:[%s3634_s0 + $0xa8] sm:$0xff] }
 0x638   :  { %2842 = vmatprep.mubr.msk.f32.mxu0 %vm33_vm1, %v2478_v51  ;;  %v2508_v51 = vld [vmem:[%s3634_s0 + $0xb0] sm:$0xff] }
 0x63b   :  { %2843 = vmatmul.mubr.msk.f32.vlgmr.msra.gmra.mrb[18].mxu0 %vm33_vm1, %v2479_v52  ;;  %v2509_v52 = vld [vmem:[%s3634_s0 + $0xb8] sm:$0xff] }
 0x63c   :  { %2845 = vmatprep.mubr.msk.f32.mxu0 %vm33_vm1, %v2480_v53  ;;  %v2516_v53 = vld [vmem:[%s3636_s2 + $0xc0] sm:$0xff] }
 0x63f   :  { %2846 = vmatmul.mubr.msk.f32.gmra.mrb[20].mxu0 %vm33_vm1, %v2481_v54  ;;  %v2517_v54 = vld [vmem:[%s3636_s2 + $0xc8] sm:$0xff] }
 0x640   :  { %2870 = vmatprep.mubr.msk.f32.mxu0 %vm3144_vm3, %v3145_v16 }
 0x706   :  { %v2825_v55 = vpop.f32.mrb[14].mxu0 }
 0x707   :  { %v1082_v56 = vadd.f32 %v2825_v55, %v3234_v17  ;;  %v1076_v57 = vpop.f32.mrb[15].mxu0  ;;  %v2518_v55 = vld [vmem:[%s3636_s2 + $0xd0] sm:$0xff] }
 0x708   :  { %v1077_v58 = vadd.f32 %v3234_v17, %v1076_v57 }
 0x709   :  { %v1096_v59 = vmax.f32 %v1082_v56, 0.0  ;;  %v2519_v56 = vld [vmem:[%s3636_s2 + $0xd8] sm:$0xff] }
 0x70a   :  { %v1095_v60 = vmax.f32 %v1077_v58, 0.0  ;;  %v2828_v61 = vpop.f32.mrb[16].mxu0 }
 0x70b   :  { %v1092_v62 = vadd.f32 %v2828_v61, %v3234_v17  ;;  %v1086_v63 = vpop.f32.mrb[17].mxu0 }
 0x70c   :  { %v3042_v1 = vpack.c.bf16 %v1096_v59, %v1095_v60  ;;  %v1087_v2 = vadd.f32 %v3234_v17, %v1086_v63 }
 0x70d   :  { %v1098_v3 = vmax.f32 %v1092_v62, 0.0 }
 0x70e   :  { %v1097_v4 = vmax.f32 %v1087_v2, 0.0  ;;  %3043 = vmatpush3.bf16.msra.mxu1 %v3042_v1  ;;  %v2844_v5 = vpop.f32.mrb[18].mxu0 }
 0x70f   :  { %3044 = vmatprep.subr.bf16.mxu1 %v3143_v15  ;;  %v1258_v6 = vpop.f32.mrb[19].mxu0 }
 0x710   :  { %v3045_v7 = vpack.c.bf16 %v1098_v3, %v1097_v4  ;;  %v3047_v8 = vpack.c.bf16 %v2844_v5, %v1258_v6 }
 0x712   :  { %3046 = vmatpush3.bf16.msra.mxu1 %v3045_v7  ;;  %v2847_v9 = vpop.f32.mrb[20].mxu0 }
 0x713   :  { %3048 = vmatprep.subr.bf16.mxu1 %v3047_v8  ;;  %v1268_v11 = vpop.f32.mrb[21].mxu0 }
 0x714   :  { %v3051_v13 = vpack.c.bf16 %v2847_v9, %v1268_v11 }
 0x715   :  { %2838 = vmatmul.mubr.msk.f32.vlgmr.msra.gmra.mrb[20].mxu1 %vm145_vm2, %v2476_v10 }
 0x716   :  { %3050 = vmatpush3.bf16.msra.mxu1 %v3047_v8  ;;  %2856 = vmatprep.mubr.msk.f32.mxu1 %vm145_vm2, %v2487_v12  ;;  %v2514_v12 = vld [vmem:[%s3635_s1 + $0x5] sm:$0x1] }
 0x717   :  { %3052 = vmatprep.subr.bf16.mxu1 %v3051_v13 }
 0x71a   :  { %3054 = vmatpush3.bf16.msra.mxu1 %v3051_v13 }
 0x71d   :  { %2857 = vmatmul.mubr.msk.f32.vlgmr.msra.gmra.mrb[22].mxu1 %vm145_vm2, %v2488_v14  ;;  %v2525_v14 = vld [vmem:[%s3634_s0 + $0xc0] sm:$0xff] }
 0x71e   :  { %2859 = vmatprep.mubr.msk.f32.mxu1 %vm145_vm2, %v2489_v18 }
 0x721   :  { %2860 = vmatmul.mubr.msk.f32.gmra.mrb[24].mxu1 %vm145_vm2, %v2490_v19  ;;  %v2526_v19 = vld [vmem:[%s3634_s0 + $0xc8] sm:$0xff] }
 0x722   :  { %2889 = vmatprep.mubr.msk.f32.mxu1 %vm145_vm2, %v2506_v41  ;;  %v2537_v41 = vld [vmem:[%s3636_s2 + $0xf0] sm:$0xff] }
 0x7e8   :  { %v1170_v20 = vpop.f32.mrb[20].mxu1 }
 0x7e9   :  { %1174 = vst.msk [vmem:[#allocation2 + $0x3] sm:$0x1] %vm321_vm4, %v1170_v20  ;;  %v2839_v21 = vpop.f32.mrb[21].mxu1  ;;  %v2527_v20 = vld [vmem:[%s3634_s0 + $0xd0] sm:$0xff] }
 0x7ea   :  { %v2528_v21 = vld [vmem:[%s3634_s0 + $0xd8] sm:$0xff] }
 0x7f0   :  { %v2858_v22 = vpop.f32.mrb[22].mxu1 }
 0x7f1   :  { %v1366_v23 = vadd.f32 %v2858_v22, %v3234_v17  ;;  %v1360_v24 = vpop.f32.mrb[23].mxu1 }
 0x7f2   :  { %v1361_v25 = vadd.f32 %v3234_v17, %v1360_v24 }
 0x7f3   :  { %v1380_v26 = vmax.f32 %v1366_v23, 0.0 }
 0x7f4   :  { %v1379_v27 = vmax.f32 %v1361_v25, 0.0  ;;  %v2861_v28 = vpop.f32.mrb[24].mxu1 }
 0x7f5   :  { %v1376_v29 = vadd.f32 %v2861_v28, %v3234_v17  ;;  %v1370_v30 = vpop.f32.mrb[25].mxu1 }
 0x7f6   :  { %v3056_v31 = vpack.c.bf16 %v1380_v26, %v1379_v27  ;;  %v1371_v32 = vadd.f32 %v3234_v17, %v1370_v30 }
 0x7f7   :  { %v1382_v33 = vmax.f32 %v1376_v29, 0.0 }
 0x7f8   :  { %v1381_v34 = vmax.f32 %v1371_v32, 0.0  ;;  %3057 = vmatpush3.bf16.msra.mxu0 %v3056_v31 }
 0x7f9   :  { %3058 = vmatprep.subr.bf16.mxu0 %v3143_v15 }
 0x7fa   :  { %v3059_v35 = vpack.c.bf16 %v1382_v33, %v1381_v34 }
 0x7fc   :  { %3060 = vmatpush3.bf16.msra.mxu0 %v3059_v35 }
 0x7fd   :  { %2873 = vmatprep.subr.msk.mxu0 %vm46_vm0, %v3190_v0 }
 0x7ff   :  { %2871 = vmatmul.mubr.msk.f32.vlgmr.msra.gmra.mrb[22].mxu0 %vm145_vm2, %v2495_v36 }
 0x800   :  { %2874 = vmatpush3.msk.msra.mxu0 %vm46_vm0, %v3190_v0  ;;  %2875 = vmatprep.mubr.msk.f32.mxu0 %vm33_vm1, %v2497_v37 }
 0x801   :  { %3069 = vmatprep.subr.bf16.mxu0 %v3143_v15 }
 0x803   :  { %2876 = vmatmul.mubr.msk.f32.vlgmr.msra.gmra.mrb[24].mxu0 %vm33_vm1, %v2498_v38  ;;  %v2533_v38 = vld [vmem:[%s3635_s1 + $0x6] sm:$0x1] }
 0x804   :  { %2878 = vmatprep.mubr.msk.f32.mxu0 %vm33_vm1, %v2499_v39  ;;  %v2535_v39 = vld [vmem:[%s3636_s2 + $0xe0] sm:$0xff] }
 0x807   :  { %2879 = vmatmul.mubr.msk.f32.gmra.mrb[26].mxu0 %vm33_vm1, %v2500_v40  ;;  %v2536_v40 = vld [vmem:[%s3636_s2 + $0xe8] sm:$0xff] }
 0x808   :  { %2903 = vmatprep.mubr.msk.f32.mxu0 %vm3144_vm3, %v3145_v16 }
 0x8d2   :  { %v1454_v42 = vpop.f32.mrb[22].mxu0 }
 0x8d3   :  { %1458 = vst.msk [vmem:[#allocation2 + $0x4] sm:$0x1] %vm321_vm4, %v1454_v42  ;;  %v2872_v43 = vpop.f32.mrb[23].mxu0  ;;  %v2544_v42 = vld [vmem:[%s3634_s0 + $0xe0] sm:$0xff] }
 0x8d6   :  { %v2877_v44 = vpop.f32.mrb[24].mxu0 }
 0x8d7   :  { %v1542_v45 = vpop.f32.mrb[25].mxu0 }
 0x8d8   :  { %v3061_v46 = vpack.c.bf16 %v2877_v44, %v1542_v45 }
 0x8da   :  { %v2880_v47 = vpop.f32.mrb[26].mxu0  ;;  %3062 = vmatprep.subr.bf16.mxu1 %v3061_v46 }
 0x8db   :  { %v1552_v48 = vpop.f32.mrb[27].mxu0  ;;  %3064 = vmatpush3.bf16.msra.mxu1 %v3061_v46 }
 0x8dc   :  { %v3065_v49 = vpack.c.bf16 %v2880_v47, %v1552_v48 }
 0x8de   :  { %3066 = vmatprep.subr.bf16.mxu1 %v3065_v49 }
 0x8df   :  { %3068 = vmatpush3.bf16.msra.mxu1 %v3065_v49 }
 0x8e0   :  { %2906 = vmatprep.subr.msk.mxu1 %vm46_vm0, %v3190_v0 }
 0x8e2   :  { %2890 = vmatmul.mubr.msk.f32.vlgmr.msra.gmra.mrb[26].mxu1 %vm145_vm2, %v2507_v50 }
 0x8e3   :  { %2892 = vmatprep.mubr.msk.f32.mxu1 %vm145_vm2, %v2508_v51  ;;  %2907 = vmatpush3.msk.msra.mxu1 %vm46_vm0, %v3190_v0  ;;  %v2545_v51 = vld [vmem:[%s3634_s0 + $0xe8] sm:$0xff] }
 0x8e4   :  { %3083 = vmatprep.subr.bf16.mxu1 %v3143_v15 }
 0x8e6   :  { %2893 = vmatmul.mubr.msk.f32.gmra.mrb[28].mxu1 %vm145_vm2, %v2509_v52  ;;  %v2546_v52 = vld [vmem:[%s3634_s0 + $0xf0] sm:$0xff] }
 0x8e7   :  { %2908 = vmatprep.mubr.msk.f32.mxu1 %vm33_vm1, %v2516_v53  ;;  %v2547_v53 = vld [vmem:[%s3634_s0 + $0xf8] sm:$0xff] }
 0x8ea   :  { %2909 = vmatmul.mubr.msk.f32.vlgmr.msra.gmra.mrb[30].mxu1 %vm33_vm1, %v2517_v54  ;;  %v2312_v54 = vld [vmem:[%s3639_s5] sm:$0xff] }
 0x8eb   :  { %2911 = vmatprep.mubr.msk.f32.mxu1 %vm33_vm1, %v2518_v55  ;;  %v2313_v55 = vld [vmem:[%s3639_s5 + $0x8] sm:$0xff] }
 0x8ee   :  { %2912 = vmatmul.mubr.msk.f32.gmra.mrb[32].mxu1 %vm33_vm1, %v2519_v56  ;;  %v2314_v56 = vld [vmem:[%s3639_s5 + $0x10] sm:$0xff] }
 0x8ef   :  { %2936 = vmatprep.mubr.msk.f32.mxu1 %vm3144_vm3, %v3145_v16 }
 0x9b5   :  { %v2891_v57 = vpop.f32.mrb[26].mxu1 }
 0x9b6   :  { %v1650_v58 = vadd.f32 %v2891_v57, %v3234_v17  ;;  %v1644_v59 = vpop.f32.mrb[27].mxu1  ;;  %v3104_v57 = vpack.c.bf16 %v2313_v55, %v2312_v54 }
 0x9b7   :  { %v1645_v60 = vadd.f32 %v3234_v17, %v1644_v59 }
 0x9b8   :  { %v1664_v61 = vmax.f32 %v1650_v58, 0.0  ;;  %v2315_v58 = vld [vmem:[%s3639_s5 + $0x18] sm:$0xff] }
 0x9b9   :  { %v1663_v62 = vmax.f32 %v1645_v60, 0.0  ;;  %v2894_v63 = vpop.f32.mrb[28].mxu1  ;;  %v3107_v59 = vpack.c.bf16 %v2315_v58, %v2314_v56 }
 0x9ba   :  { %v1660_v1 = vadd.f32 %v2894_v63, %v3234_v17  ;;  %v1654_v2 = vpop.f32.mrb[29].mxu1 }
 0x9bb   :  { %v3070_v3 = vpack.c.bf16 %v1664_v61, %v1663_v62  ;;  %v1655_v4 = vadd.f32 %v3234_v17, %v1654_v2 }
 0x9bc   :  { %v1666_v5 = vmax.f32 %v1660_v1, 0.0 }
 0x9bd   :  { %v1665_v6 = vmax.f32 %v1655_v4, 0.0  ;;  %3071 = vmatpush3.bf16.msra.mxu0 %v3070_v3  ;;  %v2910_v7 = vpop.f32.mrb[30].mxu1 }
 0x9be   :  { %3072 = vmatprep.subr.bf16.mxu0 %v3143_v15  ;;  %v1826_v8 = vpop.f32.mrb[31].mxu1 }
 0x9bf   :  { %v3073_v9 = vpack.c.bf16 %v1666_v5, %v1665_v6  ;;  %v3075_v10 = vpack.c.bf16 %v2910_v7, %v1826_v8 }
 0x9c1   :  { %3074 = vmatpush3.bf16.msra.mxu0 %v3073_v9  ;;  %v2913_v11 = vpop.f32.mrb[32].mxu1 }
 0x9c2   :  { %3076 = vmatprep.subr.bf16.mxu0 %v3075_v10  ;;  %v1836_v13 = vpop.f32.mrb[33].mxu1 }
 0x9c3   :  { %v3079_v18 = vpack.c.bf16 %v2913_v11, %v1836_v13  ;;  %v2316_v11 = vld [vmem:[%s3639_s5 + $0x20] sm:$0xff]  ;;  %v2318_v13 = vld [vmem:[%s3639_s5 + $0x30] sm:$0xff] }
 0x9c4   :  { %2904 = vmatmul.mubr.msk.f32.vlgmr.msra.gmra.mrb[28].mxu0 %vm145_vm2, %v2514_v12 }
 0x9c5   :  { %3078 = vmatpush3.bf16.msra.mxu0 %v3075_v10  ;;  %2922 = vmatprep.mubr.msk.f32.mxu0 %vm145_vm2, %v2525_v14  ;;  %v2552_v10 = vld [vmem:[%s3635_s1 + $0x7] sm:$0x1]  ;;  %v2319_v14 = vld [vmem:[%s3639_s5 + $0x38] sm:$0xff] }
 0x9c6   :  { %3080 = vmatprep.subr.bf16.mxu0 %v3079_v18 }
 0x9c9   :  { %3082 = vmatpush3.bf16.msra.mxu0 %v3079_v18  ;;  %v3113_v18 = vpack.c.bf16 %v2319_v14, %v2318_v13 }
 0x9cc   :  { %2923 = vmatmul.mubr.msk.f32.vlgmr.msra.gmra.mrb[30].mxu0 %vm145_vm2, %v2526_v19 }
 0x9cd   :  { %2925 = vmatprep.mubr.msk.f32.mxu0 %vm145_vm2, %v2527_v20 }
 0x9d0   :  { %2926 = vmatmul.mubr.msk.f32.gmra.mrb[32].mxu0 %vm145_vm2, %v2528_v21 }
 0x9d1   :  { %2955 = vmatprep.mubr.msk.f32.mxu0 %vm145_vm2, %v2544_v42 }
 0xa97   :  { %v1738_v22 = vpop.f32.mrb[28].mxu0 }
 0xa98   :  { %1742 = vst.msk [vmem:[#allocation2 + $0x5] sm:$0x1] %vm321_vm4, %v1738_v22  ;;  %v2905_v23 = vpop.f32.mrb[29].mxu0  ;;  %v2320_v22 = vld [vmem:[%s3640_s6] sm:$0xff] }
 0xa9f   :  { %v2924_v24 = vpop.f32.mrb[30].mxu0 }
 0xaa0   :  { %v1934_v25 = vadd.f32 %v2924_v24, %v3234_v17  ;;  %v1928_v26 = vpop.f32.mrb[31].mxu0 }
 0xaa1   :  { %v1929_v27 = vadd.f32 %v3234_v17, %v1928_v26 }
 0xaa2   :  { %v1948_v28 = vmax.f32 %v1934_v25, 0.0 }
 0xaa3   :  { %v1947_v29 = vmax.f32 %v1929_v27, 0.0  ;;  %v2927_v30 = vpop.f32.mrb[32].mxu0 }
 0xaa4   :  { %v1944_v31 = vadd.f32 %v2927_v30, %v3234_v17  ;;  %v1938_v32 = vpop.f32.mrb[33].mxu0 }
 0xaa5   :  { %v3084_v33 = vpack.c.bf16 %v1948_v28, %v1947_v29  ;;  %v1939_v34 = vadd.f32 %v3234_v17, %v1938_v32 }
 0xaa6   :  { %v1950_v35 = vmax.f32 %v1944_v31, 0.0 }
 0xaa7   :  { %v1949_v36 = vmax.f32 %v1939_v34, 0.0  ;;  %3085 = vmatpush3.bf16.msra.mxu1 %v3084_v33 }
 0xaa8   :  { %3086 = vmatprep.subr.bf16.mxu1 %v3143_v15 }
 0xaa9   :  { %v3087_v37 = vpack.c.bf16 %v1950_v35, %v1949_v36 }
 0xaab   :  { %3088 = vmatpush3.bf16.msra.mxu1 %v3087_v37 }
 0xaac   :  { %2939 = vmatprep.subr.msk.mxu1 %vm46_vm0, %v3190_v0 }
 0xaae   :  { %2937 = vmatmul.mubr.msk.f32.vlgmr.msra.gmra.mrb[34].mxu1 %vm145_vm2, %v2533_v38 }
 0xaaf   :  { %2940 = vmatpush3.msk.msra.mxu1 %vm46_vm0, %v3190_v0  ;;  %2941 = vmatprep.mubr.msk.f32.mxu1 %vm33_vm1, %v2535_v39  ;;  %v2538_v0 = vld [vmem:[%s3636_s2 + $0xf8] sm:$0xff] }
 0xab0   :  { %3097 = vmatprep.subr.bf16.mxu1 %v3143_v15 }
 0xab2   :  { %2942 = vmatmul.mubr.msk.f32.vlgmr.msra.gmra.mrb[36].mxu1 %vm33_vm1, %v2536_v40 }
 0xab3   :  { %2944 = vmatprep.mubr.msk.f32.mxu1 %vm33_vm1, %v2537_v41 }
 0xab6   :  { %2945 = vmatmul.mubr.msk.f32.gmra.mrb[38].mxu1 %vm33_vm1, %v2538_v0 }
 0xab7   :  { %2969 = vmatprep.mubr.msk.f32.mxu1 %vm3144_vm3, %v3145_v16 }
 0xb81   :  { %v2022_v43 = vpop.f32.mrb[34].mxu1 }
 0xb82   :  { %2026 = vst.msk [vmem:[#allocation2 + $0x6] sm:$0x1] %vm321_vm4, %v2022_v43  ;;  %v2938_v44 = vpop.f32.mrb[35].mxu1 }
 0xb85   :  { %v2943_v45 = vpop.f32.mrb[36].mxu1 }
 0xb86   :  { %v2110_v46 = vpop.f32.mrb[37].mxu1 }
 0xb87   :  { %v3089_v47 = vpack.c.bf16 %v2943_v45, %v2110_v46 }
 0xb89   :  { %v2946_v48 = vpop.f32.mrb[38].mxu1  ;;  %3090 = vmatprep.subr.bf16.mxu0 %v3089_v47 }
 0xb8a   :  { %v2120_v49 = vpop.f32.mrb[39].mxu1  ;;  %3092 = vmatpush3.bf16.msra.mxu0 %v3089_v47 }
 0xb8b   :  { %v3093_v50 = vpack.c.bf16 %v2946_v48, %v2120_v49 }
 0xb8d   :  { %3094 = vmatprep.subr.bf16.mxu0 %v3093_v50 }
 0xb8e   :  { %3096 = vmatpush3.bf16.msra.mxu0 %v3093_v50 }
 0xb8f   :  { %3103 = vmatprep.subr.bf16.mxu0 %v3143_v15 }
 0xb91   :  { %2956 = vmatmul.mubr.msk.f32.vlgmr.msra.gmra.mrb[34].mxu0 %vm145_vm2, %v2545_v51 }
 0xb92   :  { %2958 = vmatprep.mubr.msk.f32.mxu0 %vm145_vm2, %v2546_v52  ;;  %3105 = vmatpush3.bf16.msra.mxu0 %v3104_v57 }
 0xb93   :  { %3106 = vmatprep.subr.bf16.mxu0 %v3143_v15 }
 0xb95   :  { %2959 = vmatmul.mubr.msk.f32.gmra.mrb[36].mxu0 %vm145_vm2, %v2547_v53 }
 0xb96   :  { %2988 = vmatprep.mubr.msk.f32.mxu0 %vm3144_vm3, %v3145_v16  ;;  %3108 = vmatpush3.bf16.msra.mxu0 %v3107_v59 }
 0xb97   :  { %3109 = vmatprep.subr.bf16.mxu0 %v3143_v15 }
 0xc64   :  { %v2957_v16 = vpop.f32.mrb[34].mxu0 }
 0xc65   :  { %v2218_v60 = vadd.f32 %v2957_v16, %v3234_v17  ;;  %v2212_v61 = vpop.f32.mrb[35].mxu0 }
 0xc66   :  { %v2213_v62 = vadd.f32 %v3234_v17, %v2212_v61 }
 0xc67   :  { %v2232_v63 = vmax.f32 %v2218_v60, 0.0 }
 0xc68   :  { %v2231_v1 = vmax.f32 %v2213_v62, 0.0  ;;  %v2960_v2 = vpop.f32.mrb[36].mxu0 }
 0xc69   :  { %v2228_v3 = vadd.f32 %v2960_v2, %v3234_v17  ;;  %v2222_v4 = vpop.f32.mrb[37].mxu0 }
 0xc6a   :  { %v3098_v5 = vpack.c.bf16 %v2232_v63, %v2231_v1  ;;  %v2223_v6 = vadd.f32 %v3234_v17, %v2222_v4  ;;  %v2317_v17 = vld [vmem:[%s3639_s5 + $0x28] sm:$0xff]  ;;  %s3119_s5 = scalar_lea.vmem %s2403_s14, 128 }
 0xc6b   :  { %v2234_v7 = vmax.f32 %v2228_v3, 0.0  ;;  %v3110_v12 = vpack.c.bf16 %v2317_v17, %v2316_v11  ;;  %p3120_p0 = scmp.ne.s32.totalorder %s2403_s14, %s3119_s5  ;;  %p3125_p2 = scmp.lt.s32.totalorder %s3119_s5, %s3119_s5 }
 0xc6c   :  { %v2233_v8 = vmax.f32 %v2223_v6, 0.0  ;;  %3099 = vmatpush3.bf16.msra.mxu1 %v3098_v5 }
 0xc6d   :  { %3100 = vmatprep.subr.bf16.mxu1 %v3143_v15  ;;  %3111 = vmatpush3.bf16.msra.mxu0 %v3110_v12  ;;  %p3126_p3 = por %p3125_p2, %p3124_p1 }
 0xc6e   :  { %v3101_v9 = vpack.c.bf16 %v2234_v7, %v2233_v8  ;;  %3112 = vmatprep.subr.bf16.mxu0 %v3143_v15 }
 0xc6f   :  { %p3127_p4 = pnand %p3126_p3, %p3120_p0 }
 0xc70   :  { %3102 = vmatpush3.bf16.msra.mxu1 %v3101_v9 }
 0xc71   :  { %3114 = vmatpush3.bf16.msra.mxu0 %v3113_v18 }
 0xc73   :  { %2970 = vmatmul.mubr.msk.f32.vlgmr.msra.gmra.mrb[40].mxu1 %vm145_vm2, %v2552_v10 }
 0xd46   :  { %v2306_v19 = vpop.f32.mrb[40].mxu1 }
 0xd47   :  { %2310 = vst.msk [vmem:[#allocation2 + $0x7] sm:$0x1] %vm321_vm4, %v2306_v19  ;;  %v2971_v20 = vpop.f32.mrb[41].mxu1 }
 0xd4e   :  { %v2311_v21 = vld [vmem:[#allocation2] sm:$0xff] }
 0xd4f   :  { %2989 = vmatmul.mubr.msk.f32.vlgmr.msra.gmra.mrb[38].mxu0 %vm2321_vm5, %v2311_v21 }
 0xe22   :  { %v2391_v23 = vpop.f32.mrb[38].mxu0 }
 0xe23   :  { %v2392_v24 = vadd.f32 %v2391_v23, %v2320_v22  ;;  %v2990_v25 = vpop.f32.mrb[39].mxu0 }
 0xe25   :  { %2395 = vst [vmem:[#allocation3] sm:$0xff] %v2392_v24 }
 0xe26   :  { %3130 = shalt.err (!%p3127_p4)
}
 0xe27   :  { %s3131_s16 = scalar_lea.hbm %s3641_s7, 128 }
 0xe28   :  { %p3132_p5 = scmp.ne.s32.totalorder %s3641_s7, %s3131_s16  ;;  %p3135_p6 = scmp.lt.u32.totalorder %s3131_s16, %s3641_s7 }
 0xe2a   :  { %p3137_p7 = pnand %p3135_p6, %p3132_p5 }
 0xe2c   :  { %3140 = shalt.err (!%p3137_p7)
}
 0xe2d   :  { %2405 = dma.vmem_to_hbm [thread:$0]  %s2403_s14, 128, %s3641_s7, [#allocation4]  }
 0xe2e   :  { %3141 = dma.done.wait [#allocation4], 128  }
 0xe2f   :  { %3142 = vsyncadd [#allocation4], 4294967168 }
 0xe30   :  { %2409 = vsyncpa [#allocation4], 1 }

</bundles_post_ra>
